<compile_context>
chip_gen: v6e
topology: v6e:2x2x1
jax: 0.10.0
libtpu: 0.0.40
codegen_flags: <defaults>
</compile_context>

<pallas_src>
import jax
import jax.numpy as jnp
from jax.experimental import pallas as pl
from jax.experimental.pallas import tpu as pltpu


LANE = 128  # vreg / MXU native lane width


def _round_up(x, m):
    return ((x + m - 1) // m) * m


# ----------------------------------------------------------------------------- kernel
def dqn2_kernel(x_ref, w1_ref, b1_ref, w2_ref, b2_ref, w3_ref, b3_ref, o_ref):
    x = x_ref[...]                       # (TB, n_obs) f32
    n_obs = x_ref.shape[1]

    # ---- layer 1 on the VPU: K = n_obs is tiny, so unrolled rank-1 updates beat an
    # MXU push/pop round trip (esp. v5e). Static Python loop -> fully unrolled.
    acc = x[:, 0:1] * w1_ref[0:1, :]     # (TB, H) f32
    for k in range(1, n_obs):
        acc = acc + x[:, k:k + 1] * w1_ref[k:k + 1, :]
    h1 = jnp.maximum(acc + b1_ref[...], 0.0)            # ReLU, f32, (TB, H)

    # ---- layers 2 & 3 on the MXU: bf16 operands, f32 accumulation.
    h1b = h1.astype(jnp.bfloat16)
    h2 = jnp.dot(h1b, w2_ref[...], preferred_element_type=jnp.float32) + b2_ref[...]
    h2 = jnp.maximum(h2, 0.0)                            # ReLU, f32, (TB, H)

    h2b = h2.astype(jnp.bfloat16)
    out = jnp.dot(h2b, w3_ref[...], preferred_element_type=jnp.float32) + b3_ref[...]
    o_ref[...] = out.astype(o_ref.dtype)                 # lane-dense (TB, A_pad) store


# ----------------------------------------------------------------------------- wrapper
def dqn2_forward(x, packed, block_batch=256):
    """x: (B, n_observations) float32; packed: output of pack_params()."""
    w1, b1 = packed["w1"], packed["b1"]
    w2, b2 = packed["w2"], packed["b2"]
    w3, b3 = packed["w3"], packed["b3"]
    n_actions = packed["n_actions"]

    B, n_obs = x.shape
    A = w3.shape[1]

    # Batch tile: multiple of 8 sublanes, up to block_batch rows (MXU granule on
    # v6e/v7x); pad ragged batches with zero rows and slice them off afterwards.
    TB = min(block_batch, _round_up(B, 8))
    B_pad = _round_up(B, TB)
    if B_pad != B:
        x = jnp.pad(x, ((0, B_pad - B), (0, 0)))
    x = x.astype(jnp.float32)

    const = lambda shape: pl.BlockSpec(shape, lambda i: (0, 0))  # VMEM-resident weights

    out = pl.pallas_call(
        dqn2_kernel,
        out_shape=jax.ShapeDtypeStruct((B_pad, A), jnp.float32),
        grid=(B_pad // TB,),
        in_specs=[
            pl.BlockSpec((TB, n_obs), lambda i: (i, 0)),   # x: tiled over batch
            const(w1.shape), const(b1.shape),
            const(w2.shape), const(b2.shape),
            const(w3.shape), const(b3.shape),
        ],
        out_specs=pl.BlockSpec((TB, A), lambda i: (i, 0)),  # lane-dense output slab
        compiler_params=pltpu.CompilerParams(
            dimension_semantics=("parallel",),               # megacore batch sharding
            vmem_limit_bytes=32 * 1024 * 1024,               # headroom; live set ~1.5 MB
        ),
    )(x, w1, b1, w2, b2, w3, b3)

    return out[:B, :n_actions]


# ----------------------------------------------------------------------------- params
def init_dqn2_params(key, num_nodes, n_observations, n_actions):
    """nn.Linear default init (U[-1/sqrt(fan_in), +1/sqrt(fan_in)]), (in, out) layout, f32."""
    def linear(k, fan_in, fan_out):
        kw, kb = jax.random.split(k)
        bound = 1.0 / jnp.sqrt(jnp.float32(fan_in))
        w = jax.random.uniform(kw, (fan_in, fan_out), jnp.float32, -bound, bound)
        b = jax.random.uniform(kb, (1, fan_out), jnp.float32, -bound, bound)
        return w, b

    k1, k2, k3 = jax.random.split(key, 3)
    w1, b1 = linear(k1, n_observations, num_nodes)
    w2, b2 = linear(k2, num_nodes, num_nodes)
    w3, b3 = linear(k3, num_nodes, n_actions)
    return {"w1": w1, "b1": b1, "w2": w2, "b2": b2, "w3": w3, "b3": b3}


def pack_params(params):
    """Zero-pad hidden/action dims to 128 lanes; bf16 for the MXU weights (w2, w3).

    Zero padding is exact: padded hidden columns get bias 0 -> relu(0) = 0 and the
    corresponding padded weight rows are 0, so they contribute nothing downstream.
    """
    w1, b1 = params["w1"], params["b1"]
    w2, b2 = params["w2"], params["b2"]
    w3, b3 = params["w3"], params["b3"]
    n_obs, h = w1.shape
    n_act = w3.shape[1]
    H = _round_up(h, LANE)
    A = _round_up(n_act, LANE)

    def pad2(a, r, c):
        return jnp.pad(a, ((0, r - a.shape[0]), (0, c - a.shape[1])))

    return {
        "w1": pad2(w1, n_obs, H).astype(jnp.float32),   # first layer stays on the VPU in f32
        "b1": pad2(b1, 1, H).astype(jnp.float32),
        "w2": pad2(w2, H, H).astype(jnp.bfloat16),
        "b2": pad2(b2, 1, H).astype(jnp.float32),
        "w3": pad2(w3, H, A).astype(jnp.bfloat16),
        "b3": pad2(b3, 1, A).astype(jnp.float32),
        "n_actions": n_act,
    }


# ----------------------------------------------------------------------------- references
def dqn2_reference_packed(x, packed):
    """Same math / dtypes as the kernel (padded, bf16 w2/w3), in plain jnp."""
    x = x.astype(jnp.float32)
    w1, b1 = packed["w1"], packed["b1"]
    acc = x[:, 0:1] * w1[0:1, :]
    for k in range(1, x.shape[1]):
        acc = acc + x[:, k:k + 1] * w1[k:k + 1, :]
    h1 = jnp.maximum(acc + b1, 0.0).astype(jnp.bfloat16)
    h2 = jnp.maximum(
        jnp.dot(h1, packed["w2"], preferred_element_type=jnp.float32) + packed["b2"], 0.0
    ).astype(jnp.bfloat16)
    out = jnp.dot(h2, packed["w3"], preferred_element_type=jnp.float32) + packed["b3"]
    return out[:, : packed["n_actions"]]


def dqn2_reference_f32(x, params):
    """Pure-f32 reference on the unpadded params (the PyTorch-spec semantics)."""
    h1 = jnp.maximum(x @ params["w1"] + params["b1"], 0.0)
    h2 = jnp.maximum(h1 @ params["w2"] + params["b2"], 0.0)
    return h2 @ params["w3"] + params["b3"]


# ----------------------------------------------------------------------------- main
if __name__ == "__main__":
    # Pendulum-like small shapes: 3 observations, 32 hidden nodes, 5 discretized actions.
    n_observations = 3
    num_nodes = 32
    n_actions = 5
    batch = 64  # small example batch; one grid step

    key = jax.random.PRNGKey(0)
    kx, kp, kx2 = jax.random.split(key, 3)
    params = init_dqn2_params(kp, num_nodes, n_observations, n_actions)
    packed = pack_params(params)

    x = jax.random.normal(kx, (batch, n_observations), jnp.float32)
    out = jax.block_until_ready(dqn2_forward(x, packed))
    assert out.shape == (batch, n_actions)

    # Tight check vs a dtype-matched reference (identical padding / bf16 casts).
    ref_exact = dqn2_reference_packed(x, packed)
    assert jnp.allclose(out, ref_exact, atol=1e-4, rtol=1e-4), "mismatch vs matched reference"

    # Semantic check vs the pure-f32 PyTorch-style forward (bf16 rounding tolerance).
    ref_f32 = dqn2_reference_f32(x, params)
    assert jnp.allclose(out, ref_f32, atol=3e-2, rtol=3e-2), "mismatch vs f32 reference"

    # Ragged batch exercises the batch-padding path (TB rounds up to a sublane multiple).
    x2 = jax.random.normal(kx2, (37, n_observations), jnp.float32)
    out2 = jax.block_until_ready(dqn2_forward(x2, packed))
    assert out2.shape == (37, n_actions)
    assert jnp.allclose(out2, dqn2_reference_packed(x2, packed), atol=1e-4, rtol=1e-4)

    # TODO(synk): fusing the target-network forward + TD/Huber loss into this same
    # kernel (full DQN train step) is the next-level win; out of scope for the
    # forward-pass module itself.
    print("KERNEL_OK")
</pallas_src>

<mosaic_0001>
module attributes {stable_mosaic.version = 11 : i64} {
  func.func @dqn2_kernel(%arg0: i32, %arg1: memref<64x3xf32, #tpu.memory_space<vmem>>, %arg2: memref<3x128xf32, #tpu.memory_space<vmem>>, %arg3: memref<1x128xf32, #tpu.memory_space<vmem>>, %arg4: memref<128x128xbf16, #tpu.memory_space<vmem>>, %arg5: memref<1x128xf32, #tpu.memory_space<vmem>>, %arg6: memref<128x128xbf16, #tpu.memory_space<vmem>>, %arg7: memref<1x128xf32, #tpu.memory_space<vmem>>, %arg8: memref<64x128xf32, #tpu.memory_space<vmem>>) attributes {dimension_semantics = [#tpu.dimension_semantics<parallel>], iteration_bounds = array<i64: 1>, scalar_prefetch = 0 : i64, scratch_operands = 0 : i64, tpu.core_type = #tpu.core_type<tc>, window_params = [{transform_indices = @transform_0, window_bounds = array<i64: 64, 3>}, {pipeline_mode = #tpu.pipeline_mode<synchronous>, transform_indices = @transform_1, window_bounds = array<i64: 3, 128>}, {pipeline_mode = #tpu.pipeline_mode<synchronous>, transform_indices = @transform_2, window_bounds = array<i64: 1, 128>}, {pipeline_mode = #tpu.pipeline_mode<synchronous>, transform_indices = @transform_3, window_bounds = array<i64: 128, 128>}, {pipeline_mode = #tpu.pipeline_mode<synchronous>, transform_indices = @transform_4, window_bounds = array<i64: 1, 128>}, {pipeline_mode = #tpu.pipeline_mode<synchronous>, transform_indices = @transform_5, window_bounds = array<i64: 128, 128>}, {pipeline_mode = #tpu.pipeline_mode<synchronous>, transform_indices = @transform_6, window_bounds = array<i64: 1, 128>}, {transform_indices = @transform_7, window_bounds = array<i64: 64, 128>}]} {
    %c0 = arith.constant 0 : index
    %c0_0 = arith.constant 0 : index
    %0 = vector.load %arg1[%c0, %c0_0] : memref<64x3xf32, #tpu.memory_space<vmem>>, vector<64x3xf32>
    %1 = vector.extract_strided_slice %0 {offsets = [0, 0], sizes = [64, 1], strides = [1, 1]} : vector<64x3xf32> to vector<64x1xf32>
    %c0_1 = arith.constant 0 : index
    %c0_2 = arith.constant 0 : index
    %2 = vector.load %arg2[%c0_1, %c0_2] : memref<3x128xf32, #tpu.memory_space<vmem>>, vector<1x128xf32>
    %3 = vector.broadcast %1 : vector<64x1xf32> to vector<64x128xf32>
    %4 = vector.broadcast %2 : vector<1x128xf32> to vector<64x128xf32>
    %5 = arith.mulf %3, %4 : vector<64x128xf32>
    %6 = vector.extract_strided_slice %0 {offsets = [0, 1], sizes = [64, 1], strides = [1, 1]} : vector<64x3xf32> to vector<64x1xf32>
    %c1 = arith.constant 1 : index
    %c0_3 = arith.constant 0 : index
    %7 = vector.load %arg2[%c1, %c0_3] : memref<3x128xf32, #tpu.memory_space<vmem>>, vector<1x128xf32>
    %8 = vector.broadcast %6 : vector<64x1xf32> to vector<64x128xf32>
    %9 = vector.broadcast %7 : vector<1x128xf32> to vector<64x128xf32>
    %10 = arith.mulf %8, %9 : vector<64x128xf32>
    %11 = arith.addf %5, %10 : vector<64x128xf32>
    %12 = vector.extract_strided_slice %0 {offsets = [0, 2], sizes = [64, 1], strides = [1, 1]} : vector<64x3xf32> to vector<64x1xf32>
    %c2 = arith.constant 2 : index
    %c0_4 = arith.constant 0 : index
    %13 = vector.load %arg2[%c2, %c0_4] : memref<3x128xf32, #tpu.memory_space<vmem>>, vector<1x128xf32>
    %14 = vector.broadcast %12 : vector<64x1xf32> to vector<64x128xf32>
    %15 = vector.broadcast %13 : vector<1x128xf32> to vector<64x128xf32>
    %16 = arith.mulf %14, %15 : vector<64x128xf32>
    %17 = arith.addf %11, %16 : vector<64x128xf32>
    %c0_5 = arith.constant 0 : index
    %c0_6 = arith.constant 0 : index
    %18 = vector.load %arg3[%c0_5, %c0_6] : memref<1x128xf32, #tpu.memory_space<vmem>>, vector<1x128xf32>
    %19 = vector.broadcast %18 : vector<1x128xf32> to vector<64x128xf32>
    %20 = arith.addf %17, %19 : vector<64x128xf32>
    %cst = arith.constant 0.000000e+00 : f32
    %21 = vector.broadcast %cst : f32 to vector<64x128xf32>
    %22 = arith.maximumf %20, %21 : vector<64x128xf32>
    %23 = arith.truncf %22 : vector<64x128xf32> to vector<64x128xbf16>
    %c0_7 = arith.constant 0 : index
    %c0_8 = arith.constant 0 : index
    %24 = vector.load %arg4[%c0_7, %c0_8] : memref<128x128xbf16, #tpu.memory_space<vmem>>, vector<128x128xbf16>
    %cst_9 = arith.constant dense<0.000000e+00> : vector<64x128xf32>
    %25 = tpu.matmul %23, %24, %cst_9 {dimension_numbers = #tpu.dot_dimension_numbers<[1], [0], [0], [1], [0, 0, 1, 1], [], []>} : vector<64x128xbf16>, vector<128x128xbf16>, vector<64x128xf32> -> vector<64x128xf32>
    %c0_10 = arith.constant 0 : index
    %c0_11 = arith.constant 0 : index
    %26 = vector.load %arg5[%c0_10, %c0_11] : memref<1x128xf32, #tpu.memory_space<vmem>>, vector<1x128xf32>
    %27 = vector.broadcast %26 : vector<1x128xf32> to vector<64x128xf32>
    %28 = arith.addf %25, %27 : vector<64x128xf32>
    %cst_12 = arith.constant 0.000000e+00 : f32
    %29 = vector.broadcast %cst_12 : f32 to vector<64x128xf32>
    %30 = arith.maximumf %28, %29 : vector<64x128xf32>
    %31 = arith.truncf %30 : vector<64x128xf32> to vector<64x128xbf16>
    %c0_13 = arith.constant 0 : index
    %c0_14 = arith.constant 0 : index
    %32 = vector.load %arg6[%c0_13, %c0_14] : memref<128x128xbf16, #tpu.memory_space<vmem>>, vector<128x128xbf16>
    %cst_15 = arith.constant dense<0.000000e+00> : vector<64x128xf32>
    %33 = tpu.matmul %31, %32, %cst_15 {dimension_numbers = #tpu.dot_dimension_numbers<[1], [0], [0], [1], [0, 0, 1, 1], [], []>} : vector<64x128xbf16>, vector<128x128xbf16>, vector<64x128xf32> -> vector<64x128xf32>
    %c0_16 = arith.constant 0 : index
    %c0_17 = arith.constant 0 : index
    %34 = vector.load %arg7[%c0_16, %c0_17] : memref<1x128xf32, #tpu.memory_space<vmem>>, vector<1x128xf32>
    %35 = vector.broadcast %34 : vector<1x128xf32> to vector<64x128xf32>
    %36 = arith.addf %33, %35 : vector<64x128xf32>
    %c0_18 = arith.constant 0 : index
    %c0_19 = arith.constant 0 : index
    %37 = vector.load %arg8[%c0_18, %c0_19] : memref<64x128xf32, #tpu.memory_space<vmem>>, vector<64x128xf32>
    tpu.vector_store %arg8[%c0_18, %c0_19], %36 {strides = array<i32>} : memref<64x128xf32, #tpu.memory_space<vmem>>, vector<64x128xf32>,
    return
  }
  func.func @transform_0(%arg0: i32) -> (i32, i32) {
    %c0_i32 = arith.constant 0 : i32
    %c0_i32_0 = arith.constant 0 : i32
    return %arg0, %c0_i32 : i32, i32
  }
  func.func @transform_1(%arg0: i32) -> (i32, i32) {
    %c0_i32 = arith.constant 0 : i32
    %c0_i32_0 = arith.constant 0 : i32
    %c0_i32_1 = arith.constant 0 : i32
    return %c0_i32, %c0_i32_0 : i32, i32
  }
  func.func @transform_2(%arg0: i32) -> (i32, i32) {
    %c0_i32 = arith.constant 0 : i32
    %c0_i32_0 = arith.constant 0 : i32
    %c0_i32_1 = arith.constant 0 : i32
    return %c0_i32, %c0_i32_0 : i32, i32
  }
  func.func @transform_3(%arg0: i32) -> (i32, i32) {
    %c0_i32 = arith.constant 0 : i32
    %c0_i32_0 = arith.constant 0 : i32
    %c0_i32_1 = arith.constant 0 : i32
    return %c0_i32, %c0_i32_0 : i32, i32
  }
  func.func @transform_4(%arg0: i32) -> (i32, i32) {
    %c0_i32 = arith.constant 0 : i32
    %c0_i32_0 = arith.constant 0 : i32
    %c0_i32_1 = arith.constant 0 : i32
    return %c0_i32, %c0_i32_0 : i32, i32
  }
  func.func @transform_5(%arg0: i32) -> (i32, i32) {
    %c0_i32 = arith.constant 0 : i32
    %c0_i32_0 = arith.constant 0 : i32
    %c0_i32_1 = arith.constant 0 : i32
    return %c0_i32, %c0_i32_0 : i32, i32
  }
  func.func @transform_6(%arg0: i32) -> (i32, i32) {
    %c0_i32 = arith.constant 0 : i32
    %c0_i32_0 = arith.constant 0 : i32
    %c0_i32_1 = arith.constant 0 : i32
    return %c0_i32, %c0_i32_0 : i32, i32
  }
  func.func @transform_7(%arg0: i32) -> (i32, i32) {
    %c0_i32 = arith.constant 0 : i32
    %c0_i32_0 = arith.constant 0 : i32
    return %arg0, %c0_i32 : i32, i32
  }
}

</mosaic_0001>

<bundles_post_ra>
// kernel: tpu_custom_call.1
= control target key start
LH: loop header
LB: loop body
LE: loop exit
PB: predicated region body
PF: predicated region fallthrough
CT: control target
= control target key end

     0   :  { %12 = vsyncpa [#allocation3], 0  ;;  %s888_s0 = inlined_call_operand.vmem [shape: f32[64,3], index: 0, kind: input, shape index: {}]   ;;  %s889_s1 = inlined_call_operand.vmem [shape: f32[3,128], index: 1, kind: input, shape index: {}]   ;;  %s890_s2 = inlined_call_operand.vmem [shape: f32[1,128], index: 2, kind: input, shape index: {}]   ;;  %s891_s3 = inlined_call_operand.vmem [shape: bf16[128,128], index: 3, kind: input, shape index: {}]   ;;  %s892_s4 = inlined_call_operand.vmem [shape: f32[1,128], index: 4, kind: input, shape index: {}]   ;;  %s893_s5 = inlined_call_operand.hbm [shape: bf16[128,128], index: 5, kind: input, shape index: {}]   ;;  %s894_s6 = inlined_call_operand.vmem [shape: f32[1,128], index: 6, kind: input, shape index: {}]   ;;  %s895_s7 = inlined_call_operand.hbm [shape: f32[64,128], index: 7, kind: output, shape index: {}]  }
   0x1   :  { %13 = vsyncpa [#allocation4], 0  ;;  %s722_s24 = smov [#allocation2]  }
   0x2   :  { %s29_s25 = sshll.u32 %s722_s24, 4  ;;  %s30_s25 = int_to_ptr.vmem [resolvable:$true] %s29_s25 }
   0x3   :  { %s686_s26 = scalar_lea.vmem %s30_s25, 1024  ;;  %p691_p1 = scmp.lt.s32.totalorder %s30_s25, %s30_s25 }
   0x4   :  { %p687_p0 = scmp.ne.s32.totalorder %s30_s25, %s686_s26  ;;  %p692_p2 = scmp.lt.s32.totalorder %s686_s26, %s686_s26 }
   0x6   :  { %p693_p3 = por %p692_p2, %p691_p1 }
   0x8   :  { %p694_p4 = pnand %p693_p3, %p687_p0 }
   0xa   :  { %697 = shalt.err (!%p694_p4)
}
   0xb   :  { %s723_s27 = smov 64   ;;  %s724_s28 = smov 4  }
   0xc   :  { %35 = dma.hbm_to_vmem [thread:$0]  %s893_s5, 1024, %s30_s25, [#allocation3], %s723_s27, %s723_s27, %s724_s28  }
   0xd   :  { %718 = dma.done.wait [#allocation3], 1024  }
   0xe   :  { %719 = vsyncadd [#allocation3], 4294966272  ;;  %v725_v0 = vmov 1   ;;  %v726_v1 = vmov 0   ;;  %v42_v2 = vld [vmem:[%s888_s0] sm:$0xff]  ;;  %v43_v3 = vld [vmem:[%s888_s0 + $0x8] sm:$0xff] }
   0xf   :  { %649 = vset.pattern.permute.xlu1 %v725_v0  ;;  %648 = vset.pattern.permute.xlu0 %v726_v1  ;;  %v662_v4 = vld [vmem:[%s891_s3 + $0x38] sm:$0xff]   ;;  %v727_v5 = vmov 2   ;;  %v663_v7 = vld [vmem:[%s891_s3 + $0x30] sm:$0xff]   ;;  %v664_v8 = vld [vmem:[%s891_s3 + $0x28] sm:$0xff]   ;;  %s728_s22 = smov [#allocation5]  }
  0x10   :  { %105 = vperm.xlu1 %649, %v42_v2   ;;  %53 = vperm.xlu0 %648, %v42_v2   ;;  %v45_v6 = vld [vmem:[%s888_s0 + $0x18] sm:$0xff]  ;;  %v44_v9 = vld [vmem:[%s888_s0 + $0x10] sm:$0xff]  ;;  %v665_v10 = vld [vmem:[%s891_s3 + $0x20] sm:$0xff]   ;;  %s533_s23 = sshll.u32 %s728_s22, 4  ;;  %s534_s23 = int_to_ptr.vmem [resolvable:$true] %s533_s23 }
  0x11   :  { %591 = vmatprep.subr.bf16.mxu0 %v662_v4  ;;  %v46_v11 = vld [vmem:[%s888_s0 + $0x20] sm:$0xff]  ;;  %v666_v12 = vld [vmem:[%s891_s3 + $0x18] sm:$0xff]   ;;  %v667_v13 = vld [vmem:[%s891_s3 + $0x10] sm:$0xff]   ;;  %p703_p6 = scmp.lt.s32.totalorder %s534_s23, %s534_s23 }
  0x12   :  { %592 = vmatpush3.bf16.msra.mxu0 %v662_v4  ;;  %v47_v14 = vld [vmem:[%s888_s0 + $0x28] sm:$0xff]  ;;  %v48_v16 = vld [vmem:[%s888_s0 + $0x30] sm:$0xff]  ;;  %v669_v17 = vld [vmem:[%s891_s3] sm:$0xff]  }
  0x13   :  { %593 = vmatprep.subr.bf16.mxu0 %v663_v7  ;;  %v668_v15 = vld [vmem:[%s891_s3 + $0x8] sm:$0xff]   ;;  %v49_v18 = vld [vmem:[%s888_s0 + $0x38] sm:$0xff]  ;;  %v671_v20 = vld [vmem:[#allocation2 + $0x30] sm:$0xff]  }
  0x14   :  { %109 = vperm.xlu1 %649, %v43_v3   ;;  %653 = vset.pattern.permute.xlu0 %v727_v5  ;;  %v670_v19 = vld [vmem:[#allocation2 + $0x38] sm:$0xff]   ;;  %v672_v21 = vld [vmem:[#allocation2 + $0x28] sm:$0xff]   ;;  %v673_v22 = vld [vmem:[#allocation2 + $0x20] sm:$0xff]  }
  0x15   :  { %162 = vperm.xlu0 %653, %v43_v3   ;;  %615 = vmatprep.subr.bf16.mxu1 %v670_v19  ;;  %v674_v23 = vld [vmem:[#allocation2 + $0x18] sm:$0xff]   ;;  %v830_v29 = vld [vmem:[%s889_s1] ss:$0 sm:$0xff]  ;;  %v835_v31 = vld [vmem:[%s889_s1 + $0x1] ss:$0 sm:$0xff] }
  0x16   :  { %594 = vmatpush3.bf16.msra.mxu0 %v663_v7  ;;  %616 = vmatpush3.bf16.msra.mxu1 %v670_v19  ;;  %v840_v32 = vld [vmem:[%s889_s1 + $0x2] ss:$0 sm:$0xff]  ;;  %v850_v44 = vld [vmem:[%s890_s2] ss:$0 sm:$0xff] }
  0x17   :  { %595 = vmatprep.subr.bf16.mxu0 %v664_v8  ;;  %617 = vmatprep.subr.bf16.mxu1 %v671_v20 }
  0x18   :  { %650 = vset.pattern.permute.xlu1 %v726_v1 }
  0x19   :  { %68 = vperm.xlu1 %650, %v45_v6   ;;  %654 = vset.pattern.permute.xlu0 %v726_v1 }
  0x1a   :  { %58 = vperm.xlu0 %654, %v43_v3   ;;  %596 = vmatpush3.bf16.msra.mxu0 %v664_v8 }
  0x1b   :  { %597 = vmatprep.subr.bf16.mxu0 %v665_v10  ;;  %618 = vmatpush3.bf16.msra.mxu1 %v671_v20 }
  0x1c   :  { %619 = vmatprep.subr.bf16.mxu1 %v672_v21 }
  0x1d   :  { %651 = vset.pattern.permute.xlu1 %v725_v0 }
  0x1e   :  { %117 = vperm.xlu1 %651, %v45_v6   ;;  %63 = vperm.xlu0 %654, %v44_v9  }
  0x1f   :  { %598 = vmatpush3.bf16.msra.mxu0 %v665_v10  ;;  %620 = vmatpush3.bf16.msra.mxu1 %v672_v21 }
  0x20   :  { %599 = vmatprep.subr.bf16.mxu0 %v666_v12  ;;  %621 = vmatprep.subr.bf16.mxu1 %v673_v22 }
  0x22   :  { %652 = vset.pattern.permute.xlu1 %v727_v5  ;;  %73 = vperm.xlu0 %654, %v46_v11  }
  0x23   :  { %158 = vperm.xlu1 %652, %v42_v2   ;;  %600 = vmatpush3.bf16.msra.mxu0 %v666_v12 }
  0x24   :  { %601 = vmatprep.subr.bf16.mxu0 %v667_v13  ;;  %622 = vmatpush3.bf16.msra.mxu1 %v673_v22 }
  0x25   :  { %623 = vmatprep.subr.bf16.mxu1 %v674_v23 }
  0x26   :  { %655 = vset.pattern.permute.xlu0 %v725_v0 }
  0x27   :  { %166 = vperm.xlu1 %652, %v44_v9   ;;  %113 = vperm.xlu0 %655, %v44_v9  }
  0x28   :  { %602 = vmatpush3.bf16.msra.mxu0 %v667_v13  ;;  %624 = vmatpush3.bf16.msra.mxu1 %v674_v23 }
  0x29   :  { %603 = vmatprep.subr.bf16.mxu0 %v668_v15 }
  0x2b   :  { %170 = vperm.xlu1 %652, %v45_v6   ;;  %125 = vperm.xlu0 %655, %v47_v14  }
  0x2c   :  { %604 = vmatpush3.bf16.msra.mxu0 %v668_v15 }
  0x2d   :  { %605 = vmatprep.subr.bf16.mxu0 %v669_v17 }
  0x2f   :  { %656 = vset.pattern.permute.xlu1 %v726_v1  ;;  %129 = vperm.xlu0 %655, %v48_v16  }
  0x30   :  { %78 = vperm.xlu1 %656, %v47_v14   ;;  %606 = vmatpush3.bf16.msra.mxu0 %v669_v17 }
  0x33   :  { %660 = vset.pattern.permute.xlu0 %v727_v5 }
  0x34   :  { %657 = vset.pattern.permute.xlu1 %v725_v0  ;;  %174 = vperm.xlu0 %660, %v46_v11  }
  0x35   :  { %121 = vperm.xlu1 %657, %v46_v11  }
  0x38   :  { %186 = vperm.xlu0 %660, %v49_v18  }
  0x39   :  { %658 = vset.pattern.permute.xlu1 %v726_v1 }
  0x3a   :  { %83 = vperm.xlu1 %658, %v48_v16  }
  0x3e   :  { %88 = vperm.xlu1 %658, %v49_v18  }
  0x42   :  { %659 = vset.pattern.permute.xlu1 %v725_v0 }
  0x43   :  { %133 = vperm.xlu1 %659, %v49_v18  }
  0x47   :  { %661 = vset.pattern.permute.xlu1 %v727_v5 }
  0x48   :  { %178 = vperm.xlu1 %661, %v47_v14  }
  0x4c   :  { %182 = vperm.xlu1 %661, %v48_v16  }
  0x8b   :  { %v106_v24 = vpop.permute.xlu1 %105  ;;  %v54_v25 = vpop.permute.xlu0 %53 }
  0x8c   :  { %v140_v39 = vmul.f32 %v835_v31, %v106_v24  ;;  %v95_v40 = vmul.f32 %v830_v29, %v54_v25 }
  0x8e   :  { %v148_v45 = vadd.f32 %v140_v39, %v95_v40 }
  0x8f   :  { %v110_v26 = vpop.permute.xlu1 %109 }
  0x90   :  { %v163_v27 = vpop.permute.xlu0 %162  ;;  %v141_v34 = vmul.f32 %v835_v31, %v110_v26 }
  0x91   :  { %v194_v35 = vmul.f32 %v840_v32, %v163_v27 }
  0x94   :  { %v69_v28 = vpop.permute.xlu1 %68 }
  0x95   :  { %v59_v30 = vpop.permute.xlu0 %58  ;;  %v98_v55 = vmul.f32 %v830_v29, %v69_v28 }
  0x96   :  { %v96_v33 = vmul.f32 %v830_v29, %v59_v30 }
  0x98   :  { %v149_v36 = vadd.f32 %v141_v34, %v96_v33 }
  0x99   :  { %v118_v37 = vpop.permute.xlu1 %117  ;;  %v64_v38 = vpop.permute.xlu0 %63 }
  0x9a   :  { %v202_v42 = vadd.f32 %v194_v35, %v149_v36  ;;  %v97_v47 = vmul.f32 %v830_v29, %v64_v38  ;;  %v143_v52 = vmul.f32 %v835_v31, %v118_v37 }
  0x9c   :  { %v217_v49 = vadd.f32 %v850_v44, %v202_v42  ;;  %v151_v61 = vadd.f32 %v143_v52, %v98_v55 }
  0x9d   :  { %v74_v41 = vpop.permute.xlu0 %73 }
  0x9e   :  { %v159_v43 = vpop.permute.xlu1 %158  ;;  %v225_v59 = vmax.f32 %v217_v49, 0.0  ;;  %v99_v15 = vmul.f32 %v830_v29, %v74_v41 }
  0x9f   :  { %v193_v46 = vmul.f32 %v840_v32, %v159_v43 }
  0xa1   :  { %v201_v48 = vadd.f32 %v193_v46, %v148_v45 }
  0xa2   :  { %v167_v50 = vpop.permute.xlu1 %166  ;;  %v114_v51 = vpop.permute.xlu0 %113 }
  0xa3   :  { %v142_v53 = vmul.f32 %v835_v31, %v114_v51  ;;  %v216_v54 = vadd.f32 %v850_v44, %v201_v48  ;;  %v195_v56 = vmul.f32 %v840_v32, %v167_v50  ;;  %v675_v50 = vld [vmem:[#allocation2 + $0x10] sm:$0xff]   ;;  %v676_v51 = vld [vmem:[#allocation2 + $0x8] sm:$0xff]  }
  0xa4   :  { %625 = vmatprep.subr.bf16.mxu1 %v675_v50 }
  0xa5   :  { %v150_v57 = vadd.f32 %v142_v53, %v97_v47  ;;  %v224_v58 = vmax.f32 %v216_v54, 0.0  ;;  %626 = vmatpush3.bf16.msra.mxu1 %v675_v50 }
  0xa6   :  { %v171_v60 = vpop.permute.xlu1 %170  ;;  %v126_v7 = vpop.permute.xlu0 %125  ;;  %627 = vmatprep.subr.bf16.mxu1 %v676_v51 }
  0xa7   :  { %v203_v62 = vadd.f32 %v195_v56, %v150_v57  ;;  %v196_v63 = vmul.f32 %v840_v32, %v171_v60  ;;  %v232_v0 = vpack.c.bf16 %v225_v59, %v224_v58  ;;  %v145_v21 = vmul.f32 %v835_v31, %v126_v7 }
  0xa9   :  { %v204_v1 = vadd.f32 %v196_v63, %v151_v61  ;;  %607 = vmatprep.mubr.bf16.mxu0 %v232_v0  ;;  %v218_v2 = vadd.f32 %v850_v44, %v203_v62  ;;  %628 = vmatpush3.bf16.msra.mxu1 %v676_v51 }
  0xaa   :  { %v130_v10 = vpop.permute.xlu0 %129 }
  0xab   :  { %v219_v3 = vadd.f32 %v850_v44, %v204_v1  ;;  %v79_v4 = vpop.permute.xlu1 %78  ;;  %v226_v6 = vmax.f32 %v218_v2, 0.0  ;;  %v146_v30 = vmul.f32 %v835_v31, %v130_v10 }
  0xac   :  { %v100_v22 = vmul.f32 %v830_v29, %v79_v4 }
  0xad   :  { %v227_v5 = vmax.f32 %v219_v3, 0.0 }
  0xae   :  { %v153_v28 = vadd.f32 %v145_v21, %v100_v22 }
  0xaf   :  { %v233_v8 = vpack.c.bf16 %v227_v5, %v226_v6  ;;  %v175_v14 = vpop.permute.xlu0 %174 }
  0xb0   :  { %v122_v9 = vpop.permute.xlu1 %121  ;;  %v197_v17 = vmul.f32 %v840_v32, %v175_v14 }
  0xb1   :  { %608 = vmatmul.mubr.bf16.vlgmr.msra.gmra.mxu0 %v233_v8  ;;  %v144_v13 = vmul.f32 %v835_v31, %v122_v9 }
  0xb3   :  { %v152_v16 = vadd.f32 %v144_v13, %v99_v15  ;;  %v187_v20 = vpop.permute.xlu0 %186 }
  0xb4   :  { %v200_v26 = vmul.f32 %v840_v32, %v187_v20 }
  0xb5   :  { %v84_v11 = vpop.permute.xlu1 %83  ;;  %v205_v24 = vadd.f32 %v197_v17, %v152_v16  ;;  %v558_v16 = vld [vmem:[%s894_s6] ss:$0 sm:$0xff]  ;;  %s698_s6 = scalar_lea.vmem %s534_s23, 1024 }
  0xb6   :  { %v101_v33 = vmul.f32 %v830_v29, %v84_v11  ;;  %p699_p5 = scmp.ne.s32.totalorder %s534_s23, %s698_s6  ;;  %p704_p7 = scmp.lt.s32.totalorder %s698_s6, %s698_s6 }
  0xb7   :  { %v220_v35 = vadd.f32 %v850_v44, %v205_v24 }
  0xb8   :  { %v154_v39 = vadd.f32 %v146_v30, %v101_v33  ;;  %p705_p8 = por %p704_p7, %p703_p6 }
  0xb9   :  { %v89_v12 = vpop.permute.xlu1 %88  ;;  %v228_v42 = vmax.f32 %v220_v35, 0.0 }
  0xba   :  { %v102_v23 = vmul.f32 %v830_v29, %v89_v12  ;;  %p706_p9 = pnand %p705_p8, %p699_p5 }
  0xbe   :  { %v134_v18 = vpop.permute.xlu1 %133 }
  0xbf   :  { %v147_v19 = vmul.f32 %v835_v31, %v134_v18 }
  0xc1   :  { %v155_v25 = vadd.f32 %v147_v19, %v102_v23 }
  0xc3   :  { %v179_v27 = vpop.permute.xlu1 %178  ;;  %v208_v36 = vadd.f32 %v200_v26, %v155_v25 }
  0xc4   :  { %v198_v34 = vmul.f32 %v840_v32, %v179_v27 }
  0xc5   :  { %v223_v43 = vadd.f32 %v850_v44, %v208_v36 }
  0xc6   :  { %v206_v37 = vadd.f32 %v198_v34, %v153_v28 }
  0xc7   :  { %v183_v38 = vpop.permute.xlu1 %182  ;;  %v231_v47 = vmax.f32 %v223_v43, 0.0 }
  0xc8   :  { %v221_v40 = vadd.f32 %v850_v44, %v206_v37  ;;  %v199_v41 = vmul.f32 %v840_v32, %v183_v38  ;;  %v677_v32 = vld [vmem:[#allocation2] sm:$0xff]  }
  0xc9   :  { %629 = vmatprep.subr.bf16.mxu1 %v677_v32 }
  0xca   :  { %v229_v45 = vmax.f32 %v221_v40, 0.0  ;;  %v207_v46 = vadd.f32 %v199_v41, %v154_v39  ;;  %630 = vmatpush3.bf16.msra.mxu1 %v677_v32 }
  0xcc   :  { %v222_v31 = vadd.f32 %v850_v44, %v207_v46  ;;  %v234_v29 = vpack.c.bf16 %v229_v45, %v228_v42  ;;  %v549_v44 = vld [vmem:[%s892_s4] ss:$0 sm:$0xff] }
  0xce   :  { %v230_v48 = vmax.f32 %v222_v31, 0.0  ;;  %611 = vmatprep.mubr.bf16.mxu0 %v234_v29 }
  0xd0   :  { %v235_v49 = vpack.c.bf16 %v231_v47, %v230_v48 }
  0xd2   :  { %612 = vmatmul.mubr.bf16.gmra.mxu0 %v235_v49 }
 0x171   :  { %v609_v52 = vpop.f32.mrf.mxu0 }
 0x172   :  { %v350_v57 = vadd.f32 %v609_v52, %v549_v44 }
 0x173   :  { %v341_v53 = vpop.f32.mrf.mxu0 }
 0x174   :  { %v342_v55 = vadd.f32 %v549_v44, %v341_v53  ;;  %v374_v63 = vmax.f32 %v350_v57, 0.0 }
 0x175   :  { %v610_v54 = vpop.f32.mrf.mxu0 }
 0x176   :  { %v353_v56 = vadd.f32 %v610_v54, %v549_v44  ;;  %v372_v61 = vmax.f32 %v342_v55, 0.0 }
 0x177   :  { %v344_v58 = vpop.f32.mrf.mxu0 }
 0x178   :  { %v345_v59 = vadd.f32 %v549_v44, %v344_v58  ;;  %v375_v60 = vmax.f32 %v353_v56, 0.0 }
 0x17a   :  { %v373_v62 = vmax.f32 %v345_v59, 0.0  ;;  %v381_v1 = vpack.c.bf16 %v375_v60, %v374_v63 }
 0x17c   :  { %v380_v0 = vpack.c.bf16 %v373_v62, %v372_v61 }
 0x17e   :  { %631 = vmatprep.mubr.bf16.mxu1 %v380_v0 }
 0x17f   :  { %632 = vmatmul.mubr.bf16.vlgmr.msra.gmra.mxu1 %v381_v1 }
 0x192   :  { %v613_v2 = vpop.f32.mrf.mxu0 }
 0x193   :  { %v366_v7 = vadd.f32 %v613_v2, %v549_v44 }
 0x194   :  { %v357_v3 = vpop.f32.mrf.mxu0 }
 0x195   :  { %v358_v5 = vadd.f32 %v549_v44, %v357_v3  ;;  %v378_v13 = vmax.f32 %v366_v7, 0.0 }
 0x196   :  { %v614_v4 = vpop.f32.mrf.mxu0 }
 0x197   :  { %v369_v6 = vadd.f32 %v614_v4, %v549_v44  ;;  %v376_v11 = vmax.f32 %v358_v5, 0.0 }
 0x198   :  { %v360_v8 = vpop.f32.mrf.mxu0 }
 0x199   :  { %v361_v9 = vadd.f32 %v549_v44, %v360_v8  ;;  %v379_v10 = vmax.f32 %v369_v6, 0.0 }
 0x19b   :  { %v377_v12 = vmax.f32 %v361_v9, 0.0  ;;  %v383_v15 = vpack.c.bf16 %v379_v10, %v378_v13 }
 0x19d   :  { %v382_v14 = vpack.c.bf16 %v377_v12, %v376_v11 }
 0x19f   :  { %635 = vmatprep.mubr.bf16.mxu1 %v382_v14 }
 0x1a0   :  { %636 = vmatmul.mubr.bf16.gmra.mxu1 %v383_v15 }
 0x23f   :  { %v633_v17 = vpop.f32.mrf.mxu1 }
 0x240   :  { %v498_v18 = vadd.f32 %v633_v17, %v558_v16 }
 0x241   :  { %v489_v19 = vpop.f32.mrf.mxu1 }
 0x242   :  { %522 = vst [vmem:[#allocation5 + $0x10] sm:$0xff] %v498_v18  ;;  %v490_v20 = vadd.f32 %v558_v16, %v489_v19 }
 0x243   :  { %v634_v21 = vpop.f32.mrf.mxu1 }
 0x244   :  { %520 = vst [vmem:[#allocation5] sm:$0xff] %v490_v20  ;;  %v501_v22 = vadd.f32 %v634_v21, %v558_v16 }
 0x245   :  { %v492_v23 = vpop.f32.mrf.mxu1 }
 0x246   :  { %523 = vst [vmem:[#allocation5 + $0x18] sm:$0xff] %v501_v22  ;;  %v493_v24 = vadd.f32 %v558_v16, %v492_v23 }
 0x248   :  { %521 = vst [vmem:[#allocation5 + $0x8] sm:$0xff] %v493_v24 }
 0x260   :  { %v637_v25 = vpop.f32.mrf.mxu1 }
 0x261   :  { %v514_v26 = vadd.f32 %v637_v25, %v558_v16 }
 0x262   :  { %v505_v27 = vpop.f32.mrf.mxu1 }
 0x263   :  { %526 = vst [vmem:[#allocation5 + $0x30] sm:$0xff] %v514_v26  ;;  %v506_v28 = vadd.f32 %v558_v16, %v505_v27 }
 0x264   :  { %v638_v30 = vpop.f32.mrf.mxu1 }
 0x265   :  { %524 = vst [vmem:[#allocation5 + $0x20] sm:$0xff] %v506_v28  ;;  %v517_v33 = vadd.f32 %v638_v30, %v558_v16 }
 0x266   :  { %v508_v34 = vpop.f32.mrf.mxu1 }
 0x267   :  { %527 = vst [vmem:[#allocation5 + $0x38] sm:$0xff] %v517_v33  ;;  %v509_v35 = vadd.f32 %v558_v16, %v508_v34 }
 0x269   :  { %525 = vst [vmem:[#allocation5 + $0x28] sm:$0xff] %v509_v35 }
 0x26a   :  { %709 = shalt.err (!%p706_p9)
}
 0x26b   :  { %s729_s24 = smov 128   ;;  %s730_s25 = smov 8  }
 0x26c   :  { %539 = dma.vmem_to_hbm [thread:$0]  %s534_s23, 1024, %s895_s7, [#allocation4], %s729_s24, %s729_s24, %s730_s25  }
 0x26d   :  { %720 = dma.done.wait [#allocation4], 1024  }
 0x26e   :  { %721 = vsyncadd [#allocation4], 4294966272 }
 0x26f   :  { %543 = vsyncpa [#allocation3], 1 }
 0x270   :  { %544 = vsyncpa [#allocation4], 1 }

</bundles_post_ra>
